<compile_context>
chip_gen: v7x
topology: tpu7x:2x2x1
jax: 0.10.0
libtpu: 0.0.40
codegen_flags: <defaults>
</compile_context>

<pallas_src>
import functools

import jax
import jax.numpy as jnp
from jax.experimental import pallas as pl
from jax.experimental.pallas import tpu as pltpu


def _round_up(v: int, m: int) -> int:
    return (v + m - 1) // m * m


def _pick_tile_l(c_pad: int, l_out: int, tile_l: int,
                 budget: int = 24 * 1024 * 1024) -> int:
    """Largest lane tile (multiple of 128) whose VMEM footprint fits `budget`."""
    tl = _round_up(max(128, min(tile_l, _round_up(l_out, 128))), 128)

    def est(t: int) -> int:
        per_step = (2 * c_pad * (t + 128)       # xe/xo main + halo blocks
                    + 96 * 8 * c_pad + 96       # fused weights + bias (resident)
                    + 96 * t)                   # output tile
        scratch = 2 * c_pad * (t + 128) + 8 * c_pad * t   # window + im2col
        temps = 96 * t + 2 * c_pad * t                    # f32 acc + slab temps
        return 4 * (2 * per_step + scratch + temps)       # 2x = double buffering

    while tl > 128 and est(tl) > budget:
        tl -= 128
    return tl


def _cnblock_kernel(xe_ref, xeh_ref, xo_ref, xoh_ref, w_ref, b_ref, o_ref,
                    win_ref, taps_ref):
    """One (batch sample, L-tile) grid step.

    xe_ref / xo_ref   : (1, C, TL)    even / odd phase of the pad-3 input
    xeh_ref / xoh_ref : (1, C, 128)   halo (next 128 phase positions)
    w_ref             : (96, 8*C)     fused conv1/conv2/conv3 weights
    b_ref             : (96, 1)       fused bias
    o_ref             : (1, 96, TL)   output tile, NCL layout (L on lanes)
    win_ref           : (2*C, TL+128) VMEM scratch: stencil window (even;odd)
    taps_ref          : (8*C, TL)     VMEM scratch: im2col slab (tap-major)
    """
    tl = o_ref.shape[-1]
    cp = xe_ref.shape[1]

    # Assemble the stencil window once (all stores are lane/sublane aligned).
    win_ref[:cp, :tl] = xe_ref[0]
    win_ref[:cp, tl:] = xeh_ref[0]
    win_ref[cp:, :tl] = xo_ref[0]
    win_ref[cp:, tl:] = xoh_ref[0]

    # Build the (8*C, TL) im2col slab.  Phase offset j supplies tap 2j (even
    # phase) and tap 2j+1 (odd phase), i.e. rows [2j*C, (2j+2)*C).  The shifted
    # rows are written directly into the slab (no concatenated window copies).
    for j in range(4):
        taps_ref[2 * j * cp:(2 * j + 2) * cp, :] = win_ref[:, j:j + tl]

    # Single fused MXU pass: (96, 8C) x (8C, TL).
    acc = jnp.dot(w_ref[...], taps_ref[...], preferred_element_type=jnp.float32)
    o_ref[0] = (acc + b_ref[...]).astype(o_ref.dtype)


def cnblock_forward(x, w1, b1, w2, b2, w3, b3, *, tile_l: int = 2048,
                    vmem_limit_bytes: int | None = None):
    """CNBlock.forward.

    x : (N, C, L) float32;  wK : (32, C, K);  bK : (32,)
    Returns (N, 96, L // 2) = concat([conv1, conv2, conv3], channel axis).

    tile_l           : requested lane tile (auto-shrunk to fit VMEM).
    vmem_limit_bytes : optional scoped-VMEM override (e.g. 64 MiB on v6e when
                       raising tile_l; keep <= ~48 MiB on v7x's 64 MiB parts).
    """
    N, C, L = x.shape
    L_out = L // 2
    C_pad = _round_up(C, 8)

    TL = _pick_tile_l(C_pad, L_out, tile_l)
    halo_blocks = TL // 128
    num_tiles = pl.cdiv(L_out, TL)
    LP = num_tiles * TL + 128               # phase length incl. 128-lane halo

    # ---- glue: pad channels to C_pad, pad length by 3, even/odd phase split.
    # Tap k at output t reads x_pad3[2t + k]; even k -> xe[t + k//2],
    # odd k -> xo[t + k//2].
    x_pad = jnp.pad(x, ((0, 0), (0, C_pad - C), (3, 3)))
    xe = x_pad[:, :, 0::2]
    xo = x_pad[:, :, 1::2]
    xe = jnp.pad(xe, ((0, 0), (0, 0), (0, LP - xe.shape[-1])))   # (N, C_pad, LP)
    xo = jnp.pad(xo, ((0, 0), (0, 0), (0, LP - xo.shape[-1])))   # (N, C_pad, LP)

    # ---- glue: fused weights as one (96, 8*C_pad) matrix, tap-major on K.
    Wt = jnp.zeros((8, 96, C_pad), dtype=x.dtype)
    Wt = Wt.at[3:5, 0:32, :C].set(jnp.transpose(w1, (2, 0, 1)).astype(x.dtype))   # K=2, pad=0
    Wt = Wt.at[2:6, 32:64, :C].set(jnp.transpose(w2, (2, 0, 1)).astype(x.dtype))  # K=4, pad=1
    Wt = Wt.at[0:8, 64:96, :C].set(jnp.transpose(w3, (2, 0, 1)).astype(x.dtype))  # K=8, pad=3
    Wf = jnp.transpose(Wt, (1, 0, 2)).reshape(96, 8 * C_pad)                      # (96, 8*C_pad)
    bias = jnp.concatenate([b1, b2, b3]).reshape(96, 1).astype(x.dtype)

    cp_kwargs = dict(dimension_semantics=("parallel", "parallel"))
    if vmem_limit_bytes is not None:
        cp_kwargs["vmem_limit_bytes"] = int(vmem_limit_bytes)

    out = pl.pallas_call(
        _cnblock_kernel,
        out_shape=jax.ShapeDtypeStruct((N, 96, L_out), x.dtype),
        grid_spec=pltpu.PrefetchScalarGridSpec(
            num_scalar_prefetch=0,
            grid=(N, num_tiles),
            in_specs=[
                pl.BlockSpec((1, C_pad, TL), lambda n, i: (n, 0, i)),
                pl.BlockSpec((1, C_pad, 128),
                             lambda n, i: (n, 0, (i + 1) * halo_blocks)),
                pl.BlockSpec((1, C_pad, TL), lambda n, i: (n, 0, i)),
                pl.BlockSpec((1, C_pad, 128),
                             lambda n, i: (n, 0, (i + 1) * halo_blocks)),
                pl.BlockSpec((96, 8 * C_pad), lambda n, i: (0, 0)),   # resident
                pl.BlockSpec((96, 1), lambda n, i: (0, 0)),           # resident
            ],
            out_specs=pl.BlockSpec((1, 96, TL), lambda n, i: (n, 0, i)),
            scratch_shapes=[
                pltpu.VMEM((2 * C_pad, TL + 128), x.dtype),   # stencil window
                pltpu.VMEM((8 * C_pad, TL), x.dtype),         # im2col slab
            ],
        ),
        compiler_params=pltpu.CompilerParams(**cp_kwargs),
    )(xe, xe, xo, xo, Wf, bias)

    return out


def _reference_forward(x, w1, b1, w2, b2, w3, b3):
    """Pure-JAX reference (lax conv) matching the PyTorch forward."""
    dn = ("NCH", "OIH", "NCH")

    def conv(x, w, b, pad):
        y = jax.lax.conv_general_dilated(
            x, w, window_strides=(2,), padding=[(pad, pad)], dimension_numbers=dn
        )
        return y + b[None, :, None]

    y1 = conv(x, w1, b1, 0)
    y2 = conv(x, w2, b2, 1)
    y3 = conv(x, w3, b3, 3)
    return jnp.concatenate([y1, y2, y3], axis=1)


if __name__ == "__main__":
    key = jax.random.PRNGKey(0)
    kx, k1, k2, k3, kb1, kb2, kb3, kx2 = jax.random.split(key, 8)

    N, C, L = 2, 4, 256     # small: batch=2, in_channels=4, seq_len=256
    x = jax.random.normal(kx, (N, C, L), dtype=jnp.float32)

    def init_conv(kw, kb, kernel_size):
        # PyTorch default Conv1d init: U(-1/sqrt(C*K), 1/sqrt(C*K))
        bound = 1.0 / jnp.sqrt(jnp.float32(C * kernel_size))
        w = jax.random.uniform(kw, (32, C, kernel_size), jnp.float32, -bound, bound)
        b = jax.random.uniform(kb, (32,), jnp.float32, -bound, bound)
        return w, b

    w1, b1 = init_conv(k1, kb1, 2)
    w2, b2 = init_conv(k2, kb2, 4)
    w3, b3 = init_conv(k3, kb3, 8)

    # Test 1: single-tile path (L_out == TL == 128).
    fwd = jax.jit(cnblock_forward)
    out = jax.block_until_ready(fwd(x, w1, b1, w2, b2, w3, b3))
    ref = _reference_forward(x, w1, b1, w2, b2, w3, b3)
    assert out.shape == (N, 96, L // 2), out.shape
    assert jnp.allclose(out, ref, atol=1e-5, rtol=1e-5), float(jnp.abs(out - ref).max())

    # Test 2: multiple tiles (halo crosses real tile boundaries) + ragged
    # last output tile (L_out = 350, TL = 128) — review's multi-tile check.
    N2, L2 = 1, 700
    x2 = jax.random.normal(kx2, (N2, C, L2), dtype=jnp.float32)
    fwd2 = jax.jit(functools.partial(cnblock_forward, tile_l=128))
    out2 = jax.block_until_ready(fwd2(x2, w1, b1, w2, b2, w3, b3))
    ref2 = _reference_forward(x2, w1, b1, w2, b2, w3, b3)
    assert out2.shape == (N2, 96, L2 // 2), out2.shape
    assert jnp.allclose(out2, ref2, atol=1e-5, rtol=1e-5), float(jnp.abs(out2 - ref2).max())

    print("KERNEL_OK")
</pallas_src>

<mosaic_0001>
module attributes {stable_mosaic.version = 11 : i64} {
  func.func @_cnblock_kernel(%arg0: i32, %arg1: i32, %arg2: memref<1x8x128xf32, #tpu.memory_space<vmem>>, %arg3: memref<1x8x128xf32, #tpu.memory_space<vmem>>, %arg4: memref<1x8x128xf32, #tpu.memory_space<vmem>>, %arg5: memref<1x8x128xf32, #tpu.memory_space<vmem>>, %arg6: memref<96x64xf32, #tpu.memory_space<vmem>>, %arg7: memref<96x1xf32, #tpu.memory_space<vmem>>, %arg8: memref<1x96x128xf32, #tpu.memory_space<vmem>>, %arg9: memref<16x256xf32, #tpu.memory_space<vmem>>, %arg10: memref<64x128xf32, #tpu.memory_space<vmem>>) attributes {dimension_semantics = [#tpu.dimension_semantics<parallel>, #tpu.dimension_semantics<parallel>], iteration_bounds = array<i64: 2, 1>, scalar_prefetch = 0 : i64, scratch_operands = 2 : i64, tpu.core_type = #tpu.core_type<tc>, window_params = [{transform_indices = @transform_0, window_bounds = array<i64: 1, 8, 128>}, {transform_indices = @transform_1, window_bounds = array<i64: 1, 8, 128>}, {transform_indices = @transform_2, window_bounds = array<i64: 1, 8, 128>}, {transform_indices = @transform_3, window_bounds = array<i64: 1, 8, 128>}, {pipeline_mode = #tpu.pipeline_mode<synchronous>, transform_indices = @transform_4, window_bounds = array<i64: 96, 64>}, {pipeline_mode = #tpu.pipeline_mode<synchronous>, transform_indices = @transform_5, window_bounds = array<i64: 96, 1>}, {transform_indices = @transform_6, window_bounds = array<i64: 1, 96, 128>}]} {
    %c0 = arith.constant 0 : index
    %c0_0 = arith.constant 0 : index
    %c0_1 = arith.constant 0 : index
    %0 = vector.load %arg2[%c0, %c0_0, %c0_1] : memref<1x8x128xf32, #tpu.memory_space<vmem>>, vector<1x8x128xf32>
    %1 = vector.shape_cast %0 : vector<1x8x128xf32> to vector<8x128xf32>
    %c0_2 = arith.constant 0 : index
    %c0_3 = arith.constant 0 : index
    %2 = vector.load %arg9[%c0_2, %c0_3] : memref<16x256xf32, #tpu.memory_space<vmem>>, vector<8x128xf32>
    tpu.vector_store %arg9[%c0_2, %c0_3], %1 {strides = array<i32>} : memref<16x256xf32, #tpu.memory_space<vmem>>, vector<8x128xf32>,
    %c0_4 = arith.constant 0 : index
    %c0_5 = arith.constant 0 : index
    %c0_6 = arith.constant 0 : index
    %3 = vector.load %arg3[%c0_4, %c0_5, %c0_6] : memref<1x8x128xf32, #tpu.memory_space<vmem>>, vector<1x8x128xf32>
    %4 = vector.shape_cast %3 : vector<1x8x128xf32> to vector<8x128xf32>
    %c0_7 = arith.constant 0 : index
    %c128 = arith.constant 128 : index
    %5 = vector.load %arg9[%c0_7, %c128] : memref<16x256xf32, #tpu.memory_space<vmem>>, vector<8x128xf32>
    tpu.vector_store %arg9[%c0_7, %c128], %4 {strides = array<i32>} : memref<16x256xf32, #tpu.memory_space<vmem>>, vector<8x128xf32>,
    %c0_8 = arith.constant 0 : index
    %c0_9 = arith.constant 0 : index
    %c0_10 = arith.constant 0 : index
    %6 = vector.load %arg4[%c0_8, %c0_9, %c0_10] : memref<1x8x128xf32, #tpu.memory_space<vmem>>, vector<1x8x128xf32>
    %7 = vector.shape_cast %6 : vector<1x8x128xf32> to vector<8x128xf32>
    %c8 = arith.constant 8 : index
    %c0_11 = arith.constant 0 : index
    %8 = vector.load %arg9[%c8, %c0_11] : memref<16x256xf32, #tpu.memory_space<vmem>>, vector<8x128xf32>
    tpu.vector_store %arg9[%c8, %c0_11], %7 {strides = array<i32>} : memref<16x256xf32, #tpu.memory_space<vmem>>, vector<8x128xf32>,
    %c0_12 = arith.constant 0 : index
    %c0_13 = arith.constant 0 : index
    %c0_14 = arith.constant 0 : index
    %9 = vector.load %arg5[%c0_12, %c0_13, %c0_14] : memref<1x8x128xf32, #tpu.memory_space<vmem>>, vector<1x8x128xf32>
    %10 = vector.shape_cast %9 : vector<1x8x128xf32> to vector<8x128xf32>
    %c8_15 = arith.constant 8 : index
    %c128_16 = arith.constant 128 : index
    %11 = vector.load %arg9[%c8_15, %c128_16] : memref<16x256xf32, #tpu.memory_space<vmem>>, vector<8x128xf32>
    tpu.vector_store %arg9[%c8_15, %c128_16], %10 {strides = array<i32>} : memref<16x256xf32, #tpu.memory_space<vmem>>, vector<8x128xf32>,
    %c0_17 = arith.constant 0 : index
    %c0_18 = arith.constant 0 : index
    %12 = vector.load %arg9[%c0_17, %c0_18] : memref<16x256xf32, #tpu.memory_space<vmem>>, vector<16x128xf32>
    %c0_19 = arith.constant 0 : index
    %c0_20 = arith.constant 0 : index
    %13 = vector.load %arg10[%c0_19, %c0_20] : memref<64x128xf32, #tpu.memory_space<vmem>>, vector<16x128xf32>
    tpu.vector_store %arg10[%c0_19, %c0_20], %12 {strides = array<i32>} : memref<64x128xf32, #tpu.memory_space<vmem>>, vector<16x128xf32>,
    %c0_21 = arith.constant 0 : index
    %c1 = arith.constant 1 : index
    %14 = vector.load %arg9[%c0_21, %c1] : memref<16x256xf32, #tpu.memory_space<vmem>>, vector<16x128xf32>
    %c16 = arith.constant 16 : index
    %c0_22 = arith.constant 0 : index
    %15 = vector.load %arg10[%c16, %c0_22] : memref<64x128xf32, #tpu.memory_space<vmem>>, vector<16x128xf32>
    tpu.vector_store %arg10[%c16, %c0_22], %14 {strides = array<i32>} : memref<64x128xf32, #tpu.memory_space<vmem>>, vector<16x128xf32>,
    %c0_23 = arith.constant 0 : index
    %c2 = arith.constant 2 : index
    %16 = vector.load %arg9[%c0_23, %c2] : memref<16x256xf32, #tpu.memory_space<vmem>>, vector<16x128xf32>
    %c32 = arith.constant 32 : index
    %c0_24 = arith.constant 0 : index
    %17 = vector.load %arg10[%c32, %c0_24] : memref<64x128xf32, #tpu.memory_space<vmem>>, vector<16x128xf32>
    tpu.vector_store %arg10[%c32, %c0_24], %16 {strides = array<i32>} : memref<64x128xf32, #tpu.memory_space<vmem>>, vector<16x128xf32>,
    %c0_25 = arith.constant 0 : index
    %c3 = arith.constant 3 : index
    %18 = vector.load %arg9[%c0_25, %c3] : memref<16x256xf32, #tpu.memory_space<vmem>>, vector<16x128xf32>
    %c48 = arith.constant 48 : index
    %c0_26 = arith.constant 0 : index
    %19 = vector.load %arg10[%c48, %c0_26] : memref<64x128xf32, #tpu.memory_space<vmem>>, vector<16x128xf32>
    tpu.vector_store %arg10[%c48, %c0_26], %18 {strides = array<i32>} : memref<64x128xf32, #tpu.memory_space<vmem>>, vector<16x128xf32>,
    %c0_27 = arith.constant 0 : index
    %c0_28 = arith.constant 0 : index
    %20 = vector.load %arg6[%c0_27, %c0_28] : memref<96x64xf32, #tpu.memory_space<vmem>>, vector<96x64xf32>
    %c0_29 = arith.constant 0 : index
    %c0_30 = arith.constant 0 : index
    %21 = vector.load %arg10[%c0_29, %c0_30] : memref<64x128xf32, #tpu.memory_space<vmem>>, vector<64x128xf32>
    %cst = arith.constant dense<0.000000e+00> : vector<96x128xf32>
    %22 = tpu.matmul %20, %21, %cst {dimension_numbers = #tpu.dot_dimension_numbers<[1], [0], [0], [1], [0, 0, 1, 1], [], []>} : vector<96x64xf32>, vector<64x128xf32>, vector<96x128xf32> -> vector<96x128xf32>
    %c0_31 = arith.constant 0 : index
    %c0_32 = arith.constant 0 : index
    %23 = vector.load %arg7[%c0_31, %c0_32] : memref<96x1xf32, #tpu.memory_space<vmem>>, vector<96x1xf32>
    %24 = vector.broadcast %23 : vector<96x1xf32> to vector<96x128xf32>
    %25 = arith.addf %22, %24 : vector<96x128xf32>
    %c0_33 = arith.constant 0 : index
    %c0_34 = arith.constant 0 : index
    %c0_35 = arith.constant 0 : index
    %26 = vector.load %arg8[%c0_33, %c0_34, %c0_35] : memref<1x96x128xf32, #tpu.memory_space<vmem>>, vector<1x96x128xf32>
    %27 = vector.shape_cast %26 : vector<1x96x128xf32> to vector<96x128xf32>
    %28 = vector.shape_cast %25 : vector<96x128xf32> to vector<1x96x128xf32>
    tpu.vector_store %arg8[%c0_33, %c0_34, %c0_35], %28 {strides = array<i32>} : memref<1x96x128xf32, #tpu.memory_space<vmem>>, vector<1x96x128xf32>,
    return
  }
  func.func @transform_0(%arg0: i32, %arg1: i32) -> (i32, i32, i32) {
    %c0_i32 = arith.constant 0 : i32
    %c0_i32_0 = arith.constant 0 : i32
    return %arg0, %c0_i32, %arg1 : i32, i32, i32
  }
  func.func @transform_1(%arg0: i32, %arg1: i32) -> (i32, i32, i32) {
    %c1_i32 = arith.constant 1 : i32
    %0 = arith.addi %arg1, %c1_i32 : i32
    %c1_i32_0 = arith.constant 1 : i32
    %1 = arith.muli %0, %c1_i32_0 : i32
    %c0_i32 = arith.constant 0 : i32
    %c0_i32_1 = arith.constant 0 : i32
    return %arg0, %c0_i32, %1 : i32, i32, i32
  }
  func.func @transform_2(%arg0: i32, %arg1: i32) -> (i32, i32, i32) {
    %c0_i32 = arith.constant 0 : i32
    %c0_i32_0 = arith.constant 0 : i32
    return %arg0, %c0_i32, %arg1 : i32, i32, i32
  }
  func.func @transform_3(%arg0: i32, %arg1: i32) -> (i32, i32, i32) {
    %c1_i32 = arith.constant 1 : i32
    %0 = arith.addi %arg1, %c1_i32 : i32
    %c1_i32_0 = arith.constant 1 : i32
    %1 = arith.muli %0, %c1_i32_0 : i32
    %c0_i32 = arith.constant 0 : i32
    %c0_i32_1 = arith.constant 0 : i32
    return %arg0, %c0_i32, %1 : i32, i32, i32
  }
  func.func @transform_4(%arg0: i32, %arg1: i32) -> (i32, i32) {
    %c0_i32 = arith.constant 0 : i32
    %c0_i32_0 = arith.constant 0 : i32
    %c0_i32_1 = arith.constant 0 : i32
    return %c0_i32, %c0_i32_0 : i32, i32
  }
  func.func @transform_5(%arg0: i32, %arg1: i32) -> (i32, i32) {
    %c0_i32 = arith.constant 0 : i32
    %c0_i32_0 = arith.constant 0 : i32
    %c0_i32_1 = arith.constant 0 : i32
    return %c0_i32, %c0_i32_0 : i32, i32
  }
  func.func @transform_6(%arg0: i32, %arg1: i32) -> (i32, i32, i32) {
    %c0_i32 = arith.constant 0 : i32
    %c0_i32_0 = arith.constant 0 : i32
    return %arg0, %c0_i32, %arg1 : i32, i32, i32
  }
}

</mosaic_0001>

<bundles_post_ra>
// kernel: cnblock_forward.1
= control target key start
LH: loop header
LB: loop body
LE: loop exit
PB: predicated region body
PF: predicated region fallthrough
CT: control target
= control target key end

     0   :  { %11 = vsyncpa [#allocation5], 0  ;;  %s1434_s0 = inlined_call_operand.vmem [shape: f32[2,8,256], index: 0, kind: input, shape index: {}, may-alias: {0,1}]   ;;  %s1435_s1 = inlined_call_operand.vmem [shape: f32[2,8,256], index: 1, kind: input, shape index: {}, may-alias: {0,1}]   ;;  %s1436_s2 = inlined_call_operand.vmem [shape: f32[2,8,256], index: 2, kind: input, shape index: {}, may-alias: {2,3}]   ;;  %s1437_s3 = inlined_call_operand.vmem [shape: f32[2,8,256], index: 3, kind: input, shape index: {}, may-alias: {2,3}]   ;;  %s1438_s4 = inlined_call_operand.vmem [shape: f32[96,64], index: 4, kind: input, shape index: {}]   ;;  %s1439_s5 = inlined_call_operand.vmem [shape: f32[96,1], index: 5, kind: input, shape index: {}]   ;;  %s1440_s6 = inlined_call_operand.hbm [shape: f32[2,96,128], index: 6, kind: output, shape index: {}]  }
   0x1   :  { %13 = vsyncpa [#allocation5 + $0x1], 0  ;;  %s1207_s21 = smov 0   ;;  %s1209_s22 = smov 0  }
   0x2   :  { %s1211_s23 = smov 0   ;;  %s1213_s24 = smov 0  }
   0x3   :  { %s1215_s25 = smov 0   ;;  %s1217_s26 = smov 0  }
   0x4 LB: > { %s876_s27 = sadd.s32 4294967295, %s1163_s26   ;;  %s877_s28 = sadd.s32 4294967294, %s1163_s26   ;;  %s1163_s26 = sphi %s1217_s26, %s19_s26   ;;  %s1159_s25 = sphi %s1215_s25, %s1450_s25   ;;  %s1155_s24 = sphi %s1213_s24, %s1449_s24   ;;  %s1151_s23 = sphi %s1211_s23, %s1448_s23   ;;  %s1147_s22 = sphi %s1209_s22, %s1447_s22   ;;  %s1143_s21 = sphi %s1207_s21, %s1446_s21  }
   0x5   : > { %s31_s29 = sadd.s32 1, %s1159_s25  ;;  %s198_s30 = sadd.s32 1, %s1151_s23 }
   0x6   : > { %p33_p0 = scmp.ge.s32.totalorder %s31_s29, 2  ;;  %p208_p1 = scmp.ne.s32.totalorder %s1151_s23, %s1147_s22 }
   0x7   : > { %p209_p2 = scmp.eq.s32.totalorder %s876_s27, 1  ;;  %p214_p3 = scmp.ne.s32.totalorder %s1147_s22, %s1143_s21 }
   0x8   : > { %s1452_s29 = smov (%p33_p0, %s31_s29), 0  ;;  %p215_p5 = scmp.eq.s32.totalorder %s877_s28, 1 }
   0x9   : > { %1442 = sst [smem:[#allocation7_spill]] %s1452_s29  ;;  %p1247_p4 = por %p209_p2, %p208_p1 }
   0xa   : > { %s193_s8 = ssub.s32 %s1159_s25, %s1452_s29  ;;  %p880_p6 = scmp.ge.s32.totalorder %s1163_s26, 1 }
   0xb   : > { %p196_p7 = scmp.eq.s32.totalorder %s193_s8, 0  ;;  %p1254_p8 = por %p215_p5, %p214_p3 }
   0xc   : > { %p287_p9 = scmp.lt.s32.totalorder %s1163_s26, 3 }
   0xd   : > { %s1260_s10 = scalar_select %p196_p7, %s1151_s23, %s198_s30  }
   0xe   : > { %p288_p10 = pnand %p880_p6, %p287_p9 }
   0xf   : > { %p346_p11 = scmp.lt.s32.totalorder (!%p288_p10), %s1155_s24, 1  ;;  %s1166_s13 = smov (!%p288_p10), 127   ;;  %v463_v7 = vld [vmem:[%s1438_s4] sm:$0xff] (!%p288_p10)  ;;  %vm555_vm0 = vcmask (!%p288_p10), 523264   ;;  %v469_v8 = vld [vmem:[%s1438_s4 + $0x30] sm:$0xff] (!%p288_p10)  ;;  %v484_v9 = vld [vmem:[%s1439_s5 + $0x8] sm:$0xff] (!%p288_p10) }
  0x10   : > { %291 = sbr.rel (%p288_p10) target bundleno = 405 (0x195), region = 44  ;;  %948 = vmatprep.mubr.msk.f32.mxu0 (!%p288_p10), %vm555_vm0, %v463_v7  ;;  %957 = vmatprep.mubr.msk.f32.mxu1 (!%p288_p10), %vm555_vm0, %v469_v8  ;;  %v483_v10 = vld [vmem:[%s1439_s5] sm:$0xff] (!%p288_p10)  ;;  %v1168_v11 = vmov (!%p288_p10), 0   ;;  %v485_v12 = vld [vmem:[%s1439_s5 + $0x10] sm:$0xff] (!%p288_p10)  ;;  %v486_v13 = vld [vmem:[%s1439_s5 + $0x18] sm:$0xff] (!%p288_p10)  ;;  %vm433_vm1 = vcmask (!%p288_p10), 1031168  }
  0x11   : > { %1084 = vset.pattern.permute.xlu1 (!%p288_p10), %v1168_v11  ;;  %1083 = vset.pattern.permute.xlu0 (!%p288_p10), %v1168_v11  ;;  %v487_v14 = vld [vmem:[%s1439_s5 + $0x20] sm:$0xff] (!%p288_p10)  ;;  %v488_v15 = vld [vmem:[%s1439_s5 + $0x28] sm:$0xff] (!%p288_p10)  ;;  %v489_v16 = vld [vmem:[%s1439_s5 + $0x30] sm:$0xff] (!%p288_p10)  ;;  %vm410_vm2 = vcmask (!%p288_p10), 1039360   ;;  %vm456_vm3 = vcmask (!%p288_p10), 1022976  }
  0x12   : > { %v490_v17 = vld [vmem:[%s1439_s5 + $0x38] sm:$0xff] (!%p288_p10)  ;;  %v491_v18 = vld [vmem:[%s1439_s5 + $0x40] sm:$0xff] (!%p288_p10)  ;;  %v492_v19 = vld [vmem:[%s1439_s5 + $0x48] sm:$0xff] (!%p288_p10) }
  0x13   : > { %v493_v20 = vld [vmem:[%s1439_s5 + $0x50] sm:$0xff] (!%p288_p10)  ;;  %v494_v21 = vld [vmem:[%s1439_s5 + $0x58] sm:$0xff] (!%p288_p10)  ;;  %v464_v49 = vld [vmem:[%s1438_s4 + $0x8] sm:$0xff] (!%p288_p10) }
  0x14   : > { %v470_v50 = vld [vmem:[%s1438_s4 + $0x38] sm:$0xff] (!%p288_p10)  ;;  %v465_v51 = vld [vmem:[%s1438_s4 + $0x10] sm:$0xff] (!%p288_p10)  ;;  %v471_v52 = vld [vmem:[%s1438_s4 + $0x40] sm:$0xff] (!%p288_p10) }
  0x15   : > { %v466_v53 = vld [vmem:[%s1438_s4 + $0x18] sm:$0xff] (!%p288_p10)  ;;  %v472_v54 = vld [vmem:[%s1438_s4 + $0x48] sm:$0xff] (!%p288_p10)  ;;  %v467_v55 = vld [vmem:[%s1438_s4 + $0x20] sm:$0xff] (!%p288_p10) }
  0x16   : > { %v473_v56 = vld [vmem:[%s1438_s4 + $0x50] sm:$0xff] (!%p288_p10)  ;;  %v468_v57 = vld [vmem:[%s1438_s4 + $0x28] sm:$0xff] (!%p288_p10)  ;;  %v474_v58 = vld [vmem:[%s1438_s4 + $0x58] sm:$0xff] (!%p288_p10) }
  0x17   : > { %s347_s11 = scalar_select %p346_p11, %s1155_s24, 1 }
  0x19   : > { %s904_s12 = sshll.u32 %s347_s11, 4  ;;  %s1165_s11 = smov 126  }
  0x1a   : > { %s353_s15 = scalar_lea.vmem %s1434_s0, %s904_s12  ;;  %s906_s16 = sadd.s32 8, %s904_s12 }
  0x1b   : > { %s362_s19 = scalar_lea.vmem %s1435_s1, %s906_s16  ;;  %s380_s28 = scalar_lea.vmem %s1437_s3, %s906_s16  ;;  %v382_v0 = vld [vmem:[%s353_s15] sm:$0xff] }
  0x1c   : > { %v384_v1 = vld [vmem:[%s362_s19] sm:$0xff]  ;;  %s371_s29 = scalar_lea.vmem %s1436_s2, %s904_s12  ;;  %s991_s19 = smul.u32 1536, %s1155_s24 }
  0x1d   : > { %v388_v2 = vld [vmem:[%s380_s28] sm:$0xff]  ;;  %v1063_v3 = vpack.i.bf16 %v384_v1, %v382_v0 }
  0x1e   : > { %v386_v4 = vld [vmem:[%s371_s29] sm:$0xff]  ;;  %s1167_s29 = smov 125   ;;  %s1378_s28 = scalar_lea.hbm %s1440_s6, %s991_s19 }
  0x1f   : > { %v966_v5 = vpack.c.bf16 %v386_v4, %v382_v0  ;;  %1064 = vrot.lane.b32.xlu1 %v1063_v3, %s1165_s11  ;;  %1054 = vrot.lane.b32.xlu0 %v1063_v3, %s1166_s13  ;;  %v1068_v6 = vpack.i.bf16 %v388_v2, %v386_v4 }
  0x21   : > { %967 = vmatprep.subr.bf16.mxu0 %v966_v5  ;;  %982 = vmatprep.subr.bf16.mxu1 %v966_v5 }
  0x22   : > { %969 = vmatpush3.bf16.msra.mxu0 %v966_v5  ;;  %986 = vmatpush3.bf16.msra.mxu1 %v966_v5 }
  0x23   : > { %1069 = vrot.lane.b32.xlu1 %v1068_v6, %s1165_s11  ;;  %1059 = vrot.lane.b32.xlu0 %v1068_v6, %s1166_s13  ;;  %s1169_s11 = smov [#allocation4]  }
  0x24   : > { %s1089_s13 = sshll.u32 %s1169_s11, 4  ;;  %s1090_s13 = int_to_ptr.vmem [resolvable:$false] %s1089_s13 }
  0x25   : > { %s1091_s14 = scalar_lea.vmem %s1090_s13, 3072 }
  0x27   : > { %1079 = vrot.lane.b32.xlu1 %v1068_v6, %s1167_s29  ;;  %1074 = vrot.lane.b32.xlu0 %v1063_v3, %s1167_s29  ;;  %s343_s29 = sand.u32 1, %s1147_s22  }
  0x28   : > { %s990_s17 = smul.u32 96, %s343_s29  ;;  %s1388_s30 = scalar_lea.sflag [#allocation5], %s343_s29 }
  0x2a   : > { %s1363_s18 = scalar_lea.vmem [#allocation4], %s990_s17 }
  0x2b   : > { %502 = vperm.xlu1 %1084, %v484_v9   ;;  %497 = vperm.xlu0 %1083, %v483_v10   ;;  %s744_s20 = sshll.u32 %s1363_s18, 4  ;;  %s1380_s20 = int_to_ptr.vmem [resolvable:$true] %s744_s20 }
  0x2c   : > { %s1085_s8 = scalar_lea.vmem %s1380_s20, 1536  ;;  %p1092_p1 = scmp.lt.s32.totalorder %s1380_s20, %s1090_s13 }
  0x2d   : > { %p1086_p12 = scmp.ne.s32.totalorder %s1380_s20, %s1085_s8  ;;  %p1093_p2 = scmp.lt.s32.totalorder %s1091_s14, %s1085_s8 }
  0x2f   : > { %507 = vperm.xlu1 %1084, %v485_v12   ;;  %512 = vperm.xlu0 %1083, %v486_v13   ;;  %p1087_p13 = pnand %p1086_p12, %p1247_p4  ;;  %p1094_p3 = por %p1093_p2, %p1092_p1 }
  0x31   : > { %p1088_p0 = pneg %p1087_p13 }
  0x33   : > { %517 = vperm.xlu1 %1084, %v487_v14   ;;  %522 = vperm.xlu0 %1083, %v488_v15   ;;  %p1095_p5 = pnand %p1094_p3, %p1088_p0 }
  0x37   : > { %527 = vperm.xlu1 %1084, %v489_v16   ;;  %532 = vperm.xlu0 %1083, %v490_v17  }
  0x3b   : > { %537 = vperm.xlu1 %1084, %v491_v18   ;;  %542 = vperm.xlu0 %1083, %v492_v19  }
  0x3f   : > { %547 = vperm.xlu1 %1084, %v493_v20   ;;  %552 = vperm.xlu0 %1083, %v494_v21  }
  0x91   : > { %v1065_v22 = vpop.permute.xlu1 %1064  ;;  %v1055_v23 = vpop.permute.xlu0 %1054 }
  0x92   : > { %v1067_v24 = vunpack.i.h.bf16 %v1065_v22  ;;  %v1066_v25 = vunpack.i.l.bf16 %v1065_v22  ;;  %v1057_v26 = vunpack.i.h.bf16 %v1055_v23  ;;  %v1056_v27 = vunpack.i.l.bf16 %v1055_v23 }
  0x94   : > { %v434_v34 = vsel %vm433_vm1, %v1066_v25, %v1067_v24  ;;  %v411_v35 = vsel %vm410_vm2, %v1056_v27, %v1057_v26 }
  0x95   : > { %v1070_v28 = vpop.permute.xlu1 %1069  ;;  %v1060_v29 = vpop.permute.xlu0 %1059 }
  0x96   : > { %v1072_v30 = vunpack.i.h.bf16 %v1070_v28  ;;  %v1071_v31 = vunpack.i.l.bf16 %v1070_v28  ;;  %v1062_v32 = vunpack.i.h.bf16 %v1060_v29  ;;  %v1061_v33 = vunpack.i.l.bf16 %v1060_v29 }
  0x98   : > { %v435_v36 = vsel %vm433_vm1, %v1071_v31, %v1072_v30  ;;  %v412_v37 = vsel %vm410_vm2, %v1061_v33, %v1062_v32 }
  0x99   : > { %v970_v38 = vpack.c.bf16 %v412_v37, %v411_v35  ;;  %v1080_v39 = vpop.permute.xlu1 %1079  ;;  %v1075_v40 = vpop.permute.xlu0 %1074  ;;  %v974_v45 = vpack.c.bf16 %v435_v36, %v434_v34 }
  0x9a   : > { %v1082_v41 = vunpack.i.h.bf16 %v1080_v39  ;;  %v1081_v42 = vunpack.i.l.bf16 %v1080_v39  ;;  %v1077_v43 = vunpack.i.h.bf16 %v1075_v40  ;;  %v1076_v44 = vunpack.i.l.bf16 %v1075_v40 }
  0x9b   : > { %971 = vmatprep.subr.bf16.mxu0 %v970_v38  ;;  %983 = vmatprep.subr.bf16.mxu1 %v970_v38 }
  0x9c   : > { %973 = vmatpush3.bf16.msra.mxu0 %v970_v38  ;;  %987 = vmatpush3.bf16.msra.mxu1 %v970_v38  ;;  %v458_v46 = vsel %vm456_vm3, %v1081_v42, %v1082_v41  ;;  %v457_v47 = vsel %vm456_vm3, %v1076_v44, %v1077_v43 }
  0x9d   : > { %v978_v48 = vpack.c.bf16 %v458_v46, %v457_v47  ;;  %975 = vmatprep.subr.bf16.mxu0 %v974_v45  ;;  %984 = vmatprep.subr.bf16.mxu1 %v974_v45 }
  0xa0   : > { %977 = vmatpush3.bf16.msra.mxu0 %v974_v45  ;;  %988 = vmatpush3.bf16.msra.mxu1 %v974_v45 }
  0xa1   : > { %979 = vmatprep.subr.bf16.mxu0 %v978_v48  ;;  %985 = vmatprep.subr.bf16.mxu1 %v978_v48 }
  0xa4   : > { %981 = vmatpush3.bf16.msra.mxu0 %v978_v48  ;;  %989 = vmatpush3.bf16.msra.mxu1 %v978_v48 }
  0xa7   : > { %949 = vmatmul.mubr.msk.f32.vlgmr.msra.gmra.mrb[0].mxu0 %vm555_vm0, %v464_v49  ;;  %958 = vmatmul.mubr.msk.f32.vlgmr.msra.gmra.mrb[0].mxu1 %vm555_vm0, %v470_v50 }
  0xa8   : > { %951 = vmatprep.mubr.msk.f32.mxu0 %vm555_vm0, %v465_v51  ;;  %960 = vmatprep.mubr.msk.f32.mxu1 %vm555_vm0, %v471_v52 }
  0xaa   : > { %v503_v59 = vpop.permute.xlu1 %502  ;;  %v498_v60 = vpop.permute.xlu0 %497 }
  0xab   : > { %952 = vmatmul.mubr.msk.f32.gmra.mrb[2].mxu0 %vm555_vm0, %v466_v53  ;;  %961 = vmatmul.mubr.msk.f32.gmra.mrb[2].mxu1 %vm555_vm0, %v472_v54 }
  0xac   : > { %954 = vmatprep.mubr.msk.f32.mxu0 %vm555_vm0, %v467_v55  ;;  %963 = vmatprep.mubr.msk.f32.mxu1 %vm555_vm0, %v473_v56 }
  0xae   : > { %v508_v61 = vpop.permute.xlu1 %507  ;;  %v513_v62 = vpop.permute.xlu0 %512 }
  0xaf   : > { %955 = vmatmul.mubr.msk.f32.gmra.mrb[4].mxu0 %vm555_vm0, %v468_v57  ;;  %964 = vmatmul.mubr.msk.f32.gmra.mrb[4].mxu1 %vm555_vm0, %v474_v58 }
  0xb2   : > { %v518_v63 = vpop.permute.xlu1 %517  ;;  %v523_v0 = vpop.permute.xlu0 %522 }
  0xb6   : > { %v528_v1 = vpop.permute.xlu1 %527  ;;  %v533_v2 = vpop.permute.xlu0 %532 }
  0xba   : > { %v538_v3 = vpop.permute.xlu1 %537  ;;  %v543_v4 = vpop.permute.xlu0 %542 }
  0xbe   : > { %v548_v21 = vpop.permute.xlu1 %547  ;;  %v553_v22 = vpop.permute.xlu0 %552 }
 0x17a   : > { %v950_v5 = vpop.f32.mrb[0].mxu0  ;;  %v959_v6 = vpop.f32.mrb[0].mxu1 }
 0x17b   : > { %v664_v7 = vadd.f32 %v950_v5, %v503_v59  ;;  %v694_v8 = vadd.f32 %v959_v6, %v533_v2  ;;  %v658_v9 = vpop.f32.mrb[1].mxu0  ;;  %v688_v10 = vpop.f32.mrb[1].mxu1 }
 0x17c   : > { %v659_v11 = vadd.f32 %v658_v9, %v498_v60  ;;  %v689_v12 = vadd.f32 %v688_v10, %v528_v1 }
 0x17d   : > { %718 = vst [vmem:[%s1363_s18 + $0x8] sm:$0xff] %v664_v7  ;;  %724 = vst [vmem:[%s1363_s18 + $0x38] sm:$0xff] %v694_v8 }
 0x17e   : > { %717 = vst [vmem:[%s1363_s18] sm:$0xff] %v659_v11  ;;  %723 = vst [vmem:[%s1363_s18 + $0x30] sm:$0xff] %v689_v12  ;;  %v953_v13 = vpop.f32.mrb[2].mxu0  ;;  %v962_v14 = vpop.f32.mrb[2].mxu1 }
 0x17f   : > { %v674_v15 = vadd.f32 %v953_v13, %v513_v62  ;;  %v704_v16 = vadd.f32 %v962_v14, %v543_v4  ;;  %v668_v17 = vpop.f32.mrb[3].mxu0  ;;  %v698_v18 = vpop.f32.mrb[3].mxu1 }
 0x180   : > { %v669_v19 = vadd.f32 %v668_v17, %v508_v61  ;;  %v699_v20 = vadd.f32 %v698_v18, %v538_v3 }
 0x181   : > { %720 = vst [vmem:[%s1363_s18 + $0x18] sm:$0xff] %v674_v15  ;;  %726 = vst [vmem:[%s1363_s18 + $0x48] sm:$0xff] %v704_v16 }
 0x182   : > { %719 = vst [vmem:[%s1363_s18 + $0x10] sm:$0xff] %v669_v19  ;;  %725 = vst [vmem:[%s1363_s18 + $0x40] sm:$0xff] %v699_v20  ;;  %v956_v23 = vpop.f32.mrb[4].mxu0  ;;  %v965_v24 = vpop.f32.mrb[4].mxu1 }
 0x183   : > { %v684_v25 = vadd.f32 %v956_v23, %v523_v0  ;;  %v714_v26 = vadd.f32 %v965_v24, %v553_v22  ;;  %v678_v27 = vpop.f32.mrb[5].mxu0  ;;  %v708_v28 = vpop.f32.mrb[5].mxu1 }
 0x184   : > { %v679_v29 = vadd.f32 %v678_v27, %v518_v63  ;;  %v709_v30 = vadd.f32 %v708_v28, %v548_v21 }
 0x185   : > { %722 = vst [vmem:[%s1363_s18 + $0x28] sm:$0xff] %v684_v25  ;;  %728 = vst [vmem:[%s1363_s18 + $0x58] sm:$0xff] %v714_v26 }
 0x186   : > { %721 = vst [vmem:[%s1363_s18 + $0x20] sm:$0xff] %v679_v29  ;;  %727 = vst [vmem:[%s1363_s18 + $0x50] sm:$0xff] %v709_v30 }
 0x187   : > { %1098 = shalt.err (!%p1095_p5)
}
 0x188   : > { %s1099_s15 = scalar_lea.hbm %s1378_s28, 1536  ;;  %s1103_s29 = scalar_lea.hbm %s1440_s6, 3072 }
 0x189   : > { %p1100_p6 = scmp.ne.s32.totalorder %s1378_s28, %s1099_s15  ;;  %p1104_p10 = scmp.lt.u32.totalorder %s1378_s28, %s1440_s6 }
 0x18a   : > { %p1105_p11 = scmp.lt.u32.totalorder %s1103_s29, %s1099_s15  ;;  %p1107_p13 = scmp.lt.u32.totalorder %s1099_s15, %s1378_s28 }
 0x18b   : > { %p1101_p7 = pnand %p1100_p6, %p1247_p4 }
 0x18c   : > { %p1106_p12 = por %p1105_p11, %p1104_p10 }
 0x18d   : > { %p1102_p9 = pneg %p1101_p7 }
 0x18e   : > { %p1108_p0 = por %p1107_p13, %p1106_p12 }
 0x190   : > { %p1109_p1 = pnand %p1108_p0, %p1102_p9 }
 0x192   : > { %1112 = shalt.err (!%p1109_p1)
}
 0x193   : > { %s1170_s19 = smov 128   ;;  %s1171_s24 = smov 8  }
 0x194   : > { %992 = dma.vmem_to_hbm [thread:$0]  (%p1247_p4), %s1380_s20, 1536, %s1378_s28, %s1388_s30, %s1170_s19, %s1170_s19, %s1171_s24  }
 0x195 PF: > { %p998_p2 = scmp.ge.s32.totalorder %s1163_s26, 2  ;;  %s759_s27 = sand.u32 1, %s1143_s21  }
 0x196   : > { %s760_s8 = scalar_lea.sflag [#allocation5], %s759_s27 }
 0x197   : > { %p995_p3 = pnand %p998_p2, %p1254_p8 }
 0x199   : > { %1138 = dma.done.wait (!%p995_p3), %s760_s8, 1536  }
 0x19a   : > { %1140 = vsyncadd (!%p995_p3), %s760_s8, 4294965760  ;;  %s19_s26 = sadd.s32 1, %s1163_s26   ;;  %s1445_s7 = sld [smem:[#allocation7_spill]] }
 0x19b   : > { %p16_p5 = scmp.ge.s32.totalorder %s19_s26, 4   ;;  %s1446_s21 = smov %s1147_s22 }
 0x19c   : > { %s1447_s22 = smov %s1151_s23  ;;  %s1448_s23 = smov %s1260_s10 }
 0x19d   : > { %s1449_s24 = smov %s1159_s25  ;;  %18 = sbr.rel (!%p16_p5) target bundleno = 4 (0x4), region = 88 }
 0x1a0   : > { %s1450_s25 = smov %s1445_s7 }
 0x1a4   :  { %765 = vsyncpa [#allocation5], 1 }
 0x1a5   :  { %767 = vsyncpa [#allocation5 + $0x1], 1 }

</bundles_post_ra>
